<compile_context>
chip_gen: v7x
topology: tpu7x:2x2x1
jax: 0.10.0
libtpu: 0.0.40
codegen_flags: <defaults>
</compile_context>

<pallas_src>
import functools

import jax
import jax.numpy as jnp
from jax.experimental import pallas as pl
from jax.experimental.pallas import tpu as pltpu


def _round_up(x: int, m: int) -> int:
    return ((x + m - 1) // m) * m


def _cdiv(a: int, b: int) -> int:
    return -(-a // b)


def mlp2_clf_kernel(x_ref, w1_ref, b1_ref, w2_ref, b2_ref, o_ref, *, compute_dtype):
    # fc1 on the MXU: cast the f32 x tile to bf16 in-kernel (the cast is hidden
    # under the BlockSpec pipeline instead of being a separate XLA pass over
    # the whole batch in HBM); accumulate in f32.
    x = x_ref[...].astype(compute_dtype)
    h = jnp.dot(x, w1_ref[...], preferred_element_type=jnp.float32)
    h = h + b1_ref[...]                              # (1, hid) bias broadcast
    # leaky_relu (PyTorch default negative_slope = 0.01): maximum is 2 VALU
    # ops/vreg (mul+max) vs 3 for where (mul+cmp+select).
    h = jnp.maximum(h, 0.01 * h)
    # dropout(p=0.0) -> identity (no-op).
    # fc2 has a single output column: VPU broadcast-multiply + lane reduction
    # (free filler next to the MXU) instead of an N=1 MXU matmul.
    z = jnp.sum(h * w2_ref[...], axis=-1, keepdims=True) + b2_ref[...]
    # Numerically safe sigmoid: clamp so exp never overflows (sigmoid is
    # saturated to within f32 eps well inside +-30), then an exact divide —
    # avoids approx-reciprocal error on the output probability.
    z = jnp.clip(z, -30.0, 30.0)
    o_ref[...] = 1.0 / (1.0 + jnp.exp(-z))


def _choose_batch_tile(B: int, max_tb: int) -> int:
    """Balanced batch tile.

    Minimizes tail waste (TB ~ cdiv(B, n_tiles)) and keeps the grid >= 2 (and
    even when small) for large B so both v7x TensorCores get balanced work
    under dimension_semantics=("parallel",).  No-op concern on v5e/v6e (1 TC).
    """
    n_tiles = max(1, _cdiv(B, max_tb))
    if n_tiles == 1 and B >= 1024:
        n_tiles = 2
    elif 1 < n_tiles < 8 and n_tiles % 2 == 1:
        n_tiles += 1
    return _round_up(_cdiv(B, n_tiles), 8)


def _vmem_estimate_bytes(TB: int, in_dim: int, hid: int, compute_dtype) -> int:
    """Honest VMEM estimate: narrow blocks are lane-padded to 128, blocks are
    double-buffered, and the f32 fc1 activation plus the fc2 elementwise
    product are materialized in VMEM scratch."""
    LANE, SUB = 128, 8
    isz = jnp.dtype(compute_dtype).itemsize
    pad_l = lambda n: _round_up(max(n, 1), LANE)
    x_bufs = 2 * TB * pad_l(in_dim) * 4            # f32 x tiles (lane-padded), double-buffered
    out_bufs = 2 * TB * pad_l(1) * 4               # (TB,1) f32 out tiles stored as (TB,128)
    w_bufs = 2 * (in_dim * pad_l(hid) * isz        # w1 (resident but double-buffered)
                  + SUB * pad_l(hid) * 4 * 2       # b1 row + w2 row (sublane-padded)
                  + SUB * LANE * 4)                # b2
    act = TB * pad_l(hid) * 4                      # f32 fc1 activation h
    tmp = TB * pad_l(hid) * 4                      # h * w2 elementwise product
    xcast = TB * pad_l(in_dim) * isz               # in-kernel bf16 copy of the x tile
    return x_bufs + out_bufs + w_bufs + act + tmp + xcast


def mlp2_clf_forward(x, w1_eff, b1, w2_eff, b2, *, max_tb=2048,
                     compute_dtype=jnp.bfloat16):
    """x: (B, in_dim) f32; w1_eff: (in_dim, hid); b1: (hid,);
    w2_eff: (hid, 1); b2: (1,).  Returns (B, 1) f32."""
    B, in_dim = x.shape
    hid = w1_eff.shape[1]

    TB = _choose_batch_tile(B, max_tb)
    grid_b = _cdiv(B, TB)
    # No jnp.pad: the ragged last tile (if any) is handled by Pallas's masked
    # edge blocks — OOB input rows are garbage that never reaches HBM, OOB
    # output rows are dropped by the masked store.

    # bf16 for the MXU operands of fc1 (weights cast once here, x cast
    # in-kernel); everything downstream of the dot stays f32.
    w1_c = w1_eff.astype(compute_dtype)
    b1_2d = b1.reshape(1, hid).astype(jnp.float32)
    w2_row = w2_eff.reshape(1, hid).astype(jnp.float32)   # fc2 row for the VPU reduce
    b2_2d = b2.reshape(1, 1).astype(jnp.float32)

    vmem_limit = int(1.25 * _vmem_estimate_bytes(TB, in_dim, hid, compute_dtype)) + (2 << 20)
    vmem_limit = max(vmem_limit, 16 << 20)
    vmem_limit = min(vmem_limit, 48 << 20)   # stays well under v7x's 64 MiB physical VMEM

    kernel = functools.partial(mlp2_clf_kernel, compute_dtype=compute_dtype)

    out = pl.pallas_call(
        kernel,
        out_shape=jax.ShapeDtypeStruct((B, 1), jnp.float32),
        grid=(grid_b,),
        in_specs=[
            pl.BlockSpec((TB, in_dim), lambda i: (i, 0)),   # x: batch-tiled, f32
            pl.BlockSpec((in_dim, hid), lambda i: (0, 0)),  # w1: VMEM-resident bf16
            pl.BlockSpec((1, hid), lambda i: (0, 0)),       # b1
            pl.BlockSpec((1, hid), lambda i: (0, 0)),       # w2 row
            pl.BlockSpec((1, 1), lambda i: (0, 0)),         # b2
        ],
        out_specs=pl.BlockSpec((TB, 1), lambda i: (i, 0)),
        compiler_params=pltpu.CompilerParams(
            dimension_semantics=("parallel",),
            vmem_limit_bytes=vmem_limit,
        ),
    )(x, w1_c, b1_2d, w2_row, b2_2d)
    return out


def make_params(key, in_dim, hid):
    """Deterministic synthetic parameters mimicking the module's shapes.
    weight_norm(dim=None) parameterization: W = g * V / ||V||_F (g scalar)."""
    k1, k2, k3, k4, k5, k6 = jax.random.split(key, 6)
    v1 = jax.random.normal(k1, (hid, in_dim), jnp.float32) * 0.05
    g1 = 1.0 + 0.1 * jax.random.normal(k2, (), jnp.float32)
    b1 = jax.random.normal(k3, (hid,), jnp.float32) * 0.01
    v2 = jax.random.normal(k4, (1, hid), jnp.float32) * 0.05
    g2 = 1.0 + 0.1 * jax.random.normal(k5, (), jnp.float32)
    b2 = jax.random.normal(k6, (1,), jnp.float32) * 0.01

    w1 = g1 * v1 / jnp.linalg.norm(v1)          # (hid, in_dim)
    w2 = g2 * v2 / jnp.linalg.norm(v2)          # (1, hid)
    # Pre-transpose for row-major matmuls inside the kernel.
    return w1.T, b1, w2.T, b2                   # (in_dim,hid), (hid,), (hid,1), (1,)


def reference_forward(x, w1_eff, b1, w2_eff, b2):
    h = x @ w1_eff + b1[None, :]
    h = jnp.where(h > 0, h, 0.01 * h)
    z = h @ w2_eff + b2[None, :]
    return jax.nn.sigmoid(z)


if __name__ == "__main__":
    in_dim, hid = 32, 512   # hid_2 = 512 as in the source file
    key = jax.random.PRNGKey(0)
    kx, kp, kx2 = jax.random.split(key, 3)
    w1_eff, b1, w2_eff, b2 = make_params(kp, in_dim, hid)

    # Small-batch check (single tile, divisible).
    B = 8
    x = jax.random.normal(kx, (B, in_dim), jnp.float32)
    out = jax.block_until_ready(mlp2_clf_forward(x, w1_eff, b1, w2_eff, b2))
    ref = reference_forward(x, w1_eff, b1, w2_eff, b2)
    assert out.shape == (B, 1)
    assert jnp.allclose(out, ref, atol=5e-3, rtol=0), "mismatch vs reference (small B)"

    # Multi-tile check: exercises the balanced batch grid + the masked ragged
    # last tile (B not a multiple of 8, so no tile size divides it).
    B2 = 2050
    x2 = jax.random.normal(kx2, (B2, in_dim), jnp.float32)
    out2 = jax.block_until_ready(mlp2_clf_forward(x2, w1_eff, b1, w2_eff, b2))
    ref2 = reference_forward(x2, w1_eff, b1, w2_eff, b2)
    assert out2.shape == (B2, 1)
    assert jnp.allclose(out2, ref2, atol=5e-3, rtol=0), "mismatch vs reference (large B)"

    print("KERNEL_OK")
</pallas_src>

<mosaic_0001>
module attributes {stable_mosaic.version = 11 : i64} {
  func.func @mlp2_clf_kernel(%arg0: i32, %arg1: memref<8x32xf32, #tpu.memory_space<vmem>>, %arg2: memref<32x512xbf16, #tpu.memory_space<vmem>>, %arg3: memref<1x512xf32, #tpu.memory_space<vmem>>, %arg4: memref<1x512xf32, #tpu.memory_space<vmem>>, %arg5: memref<1x1xf32, #tpu.memory_space<vmem>>, %arg6: memref<8x1xf32, #tpu.memory_space<vmem>>) attributes {dimension_semantics = [#tpu.dimension_semantics<parallel>], iteration_bounds = array<i64: 1>, scalar_prefetch = 0 : i64, scratch_operands = 0 : i64, tpu.core_type = #tpu.core_type<tc>, window_params = [{transform_indices = @transform_0, window_bounds = array<i64: 8, 32>}, {pipeline_mode = #tpu.pipeline_mode<synchronous>, transform_indices = @transform_1, window_bounds = array<i64: 32, 512>}, {pipeline_mode = #tpu.pipeline_mode<synchronous>, transform_indices = @transform_2, window_bounds = array<i64: 1, 512>}, {pipeline_mode = #tpu.pipeline_mode<synchronous>, transform_indices = @transform_3, window_bounds = array<i64: 1, 512>}, {pipeline_mode = #tpu.pipeline_mode<synchronous>, transform_indices = @transform_4, window_bounds = array<i64: 1, 1>}, {transform_indices = @transform_5, window_bounds = array<i64: 8, 1>}]} {
    %c0 = arith.constant 0 : index
    %c0_0 = arith.constant 0 : index
    %0 = vector.load %arg1[%c0, %c0_0] : memref<8x32xf32, #tpu.memory_space<vmem>>, vector<8x32xf32>
    %1 = arith.truncf %0 : vector<8x32xf32> to vector<8x32xbf16>
    %c0_1 = arith.constant 0 : index
    %c0_2 = arith.constant 0 : index
    %2 = vector.load %arg2[%c0_1, %c0_2] : memref<32x512xbf16, #tpu.memory_space<vmem>>, vector<32x512xbf16>
    %cst = arith.constant dense<0.000000e+00> : vector<8x512xf32>
    %3 = tpu.matmul %1, %2, %cst {dimension_numbers = #tpu.dot_dimension_numbers<[1], [0], [0], [1], [0, 0, 1, 1], [], []>} : vector<8x32xbf16>, vector<32x512xbf16>, vector<8x512xf32> -> vector<8x512xf32>
    %c0_3 = arith.constant 0 : index
    %c0_4 = arith.constant 0 : index
    %4 = vector.load %arg3[%c0_3, %c0_4] : memref<1x512xf32, #tpu.memory_space<vmem>>, vector<1x512xf32>
    %5 = vector.broadcast %4 : vector<1x512xf32> to vector<8x512xf32>
    %6 = arith.addf %3, %5 : vector<8x512xf32>
    %cst_5 = arith.constant 0.00999999977 : f32
    %7 = vector.broadcast %cst_5 : f32 to vector<8x512xf32>
    %8 = arith.mulf %7, %6 : vector<8x512xf32>
    %9 = arith.maximumf %6, %8 : vector<8x512xf32>
    %c0_6 = arith.constant 0 : index
    %c0_7 = arith.constant 0 : index
    %10 = vector.load %arg4[%c0_6, %c0_7] : memref<1x512xf32, #tpu.memory_space<vmem>>, vector<1x512xf32>
    %11 = vector.broadcast %10 : vector<1x512xf32> to vector<8x512xf32>
    %12 = arith.mulf %9, %11 : vector<8x512xf32>
    %cst_8 = arith.constant dense<0.000000e+00> : vector<8xf32>
    %13 = vector.multi_reduction <add>, %12, %cst_8 [1] : vector<8x512xf32> to vector<8xf32>
    %14 = vector.shape_cast %13 : vector<8xf32> to vector<8x1xf32>
    %c0_9 = arith.constant 0 : index
    %c0_10 = arith.constant 0 : index
    %15 = vector.load %arg5[%c0_9, %c0_10] : memref<1x1xf32, #tpu.memory_space<vmem>>, vector<1x1xf32>
    %16 = vector.broadcast %15 : vector<1x1xf32> to vector<8x1xf32>
    %17 = arith.addf %14, %16 : vector<8x1xf32>
    %cst_11 = arith.constant -3.000000e+01 : f32
    %cst_12 = arith.constant 3.000000e+01 : f32
    %18 = vector.broadcast %cst_11 : f32 to vector<8x1xf32>
    %19 = arith.maximumf %18, %17 : vector<8x1xf32>
    %20 = vector.broadcast %cst_12 : f32 to vector<8x1xf32>
    %21 = arith.minimumf %20, %19 : vector<8x1xf32>
    %cst_13 = arith.constant 0.000000e+00 : f32
    %22 = vector.broadcast %cst_13 : f32 to vector<8x1xf32>
    %23 = arith.subf %22, %21 : vector<8x1xf32>
    %24 = math.exp %23 : vector<8x1xf32>
    %cst_14 = arith.constant 1.000000e+00 : f32
    %25 = vector.broadcast %cst_14 : f32 to vector<8x1xf32>
    %26 = arith.addf %25, %24 : vector<8x1xf32>
    %cst_15 = arith.constant 1.000000e+00 : f32
    %27 = vector.broadcast %cst_15 : f32 to vector<8x1xf32>
    %28 = arith.divf %27, %26 : vector<8x1xf32>
    %c0_16 = arith.constant 0 : index
    %c0_17 = arith.constant 0 : index
    %29 = vector.load %arg6[%c0_16, %c0_17] : memref<8x1xf32, #tpu.memory_space<vmem>>, vector<8x1xf32>
    tpu.vector_store %arg6[%c0_16, %c0_17], %28 {strides = array<i32>} : memref<8x1xf32, #tpu.memory_space<vmem>>, vector<8x1xf32>,
    return
  }
  func.func @transform_0(%arg0: i32) -> (i32, i32) {
    %c0_i32 = arith.constant 0 : i32
    %c0_i32_0 = arith.constant 0 : i32
    return %arg0, %c0_i32 : i32, i32
  }
  func.func @transform_1(%arg0: i32) -> (i32, i32) {
    %c0_i32 = arith.constant 0 : i32
    %c0_i32_0 = arith.constant 0 : i32
    %c0_i32_1 = arith.constant 0 : i32
    return %c0_i32, %c0_i32_0 : i32, i32
  }
  func.func @transform_2(%arg0: i32) -> (i32, i32) {
    %c0_i32 = arith.constant 0 : i32
    %c0_i32_0 = arith.constant 0 : i32
    %c0_i32_1 = arith.constant 0 : i32
    return %c0_i32, %c0_i32_0 : i32, i32
  }
  func.func @transform_3(%arg0: i32) -> (i32, i32) {
    %c0_i32 = arith.constant 0 : i32
    %c0_i32_0 = arith.constant 0 : i32
    %c0_i32_1 = arith.constant 0 : i32
    return %c0_i32, %c0_i32_0 : i32, i32
  }
  func.func @transform_4(%arg0: i32) -> (i32, i32) {
    %c0_i32 = arith.constant 0 : i32
    %c0_i32_0 = arith.constant 0 : i32
    %c0_i32_1 = arith.constant 0 : i32
    return %c0_i32, %c0_i32_0 : i32, i32
  }
  func.func @transform_5(%arg0: i32) -> (i32, i32) {
    %c0_i32 = arith.constant 0 : i32
    %c0_i32_0 = arith.constant 0 : i32
    return %arg0, %c0_i32 : i32, i32
  }
}

</mosaic_0001>

<bundles_post_ra>
// kernel: tpu_custom_call.1
= control target key start
LH: loop header
LB: loop body
LE: loop exit
PB: predicated region body
PF: predicated region fallthrough
CT: control target
= control target key end

     0   :  { %s429_s0 = inlined_call_operand.hbm [shape: f32[8,32], index: 0, kind: input, shape index: {}]   ;;  %s430_s1 = inlined_call_operand.hbm [shape: bf16[32,512], index: 1, kind: input, shape index: {}]   ;;  %s431_s2 = inlined_call_operand.vmem [shape: f32[1,512], index: 2, kind: input, shape index: {}]   ;;  %s432_s3 = inlined_call_operand.vmem [shape: f32[1,512], index: 3, kind: input, shape index: {}]   ;;  %s433_s4 = inlined_call_operand.<no memory space> [shape: f32[1,1], index: 4, kind: input, shape index: {}]   ;;  %s434_s5 = inlined_call_operand.vmem [shape: f32[8,1], index: 5, kind: output, shape index: {}]  }
   0x1   :  { %v10_v0 = vstv %s433_s4 }
   0x2   :  { %11 = vst [vmem:[#allocation2] sm:$0x1] %v10_v0 }
   0x3   :  { %12 = vsyncpa [#allocation4], 0 }
   0x4   :  { %13 = vsyncpa [#allocation6], 0  ;;  %s351_s20 = smov [#allocation3]   ;;  %s352_s22 = smov [#allocation5]  }
   0x5   :  { %s20_s21 = sshll.u32 %s351_s20, 4  ;;  %s29_s23 = sshll.u32 %s352_s22, 4  ;;  %s21_s21 = int_to_ptr.vmem [resolvable:$true] %s20_s21  ;;  %s389_s23 = int_to_ptr.vmem [resolvable:$true] %s29_s23 }
   0x6   :  { %s303_s26 = scalar_lea.hbm %s429_s0, 128 }
   0x7   :  { %p304_p0 = scmp.ne.s32.totalorder %s429_s0, %s303_s26  ;;  %p307_p1 = scmp.lt.u32.totalorder %s303_s26, %s429_s0 }
   0x9   :  { %p309_p2 = pnand %p307_p1, %p304_p0 }
   0xb   :  { %312 = shalt.err (!%p309_p2)
}
   0xc   :  { %s313_s30 = scalar_lea.vmem %s21_s21, 128  ;;  %p318_p4 = scmp.lt.s32.totalorder %s21_s21, %s21_s21 }
   0xd   :  { %p314_p3 = scmp.ne.s32.totalorder %s21_s21, %s313_s30  ;;  %p319_p5 = scmp.lt.s32.totalorder %s313_s30, %s313_s30 }
   0xf   :  { %p320_p6 = por %p319_p5, %p318_p4 }
  0x11   :  { %p321_p7 = pnand %p320_p6, %p314_p3 }
  0x13   :  { %324 = shalt.err (!%p321_p7)
}
  0x14   :  { %23 = dma.hbm_to_vmem [thread:$0]  %s429_s0, 128, %s21_s21, [#allocation4]  }
  0x15   :  { %s325_s10 = scalar_lea.hbm %s430_s1, 1024 }
  0x16   :  { %p326_p8 = scmp.ne.s32.totalorder %s430_s1, %s325_s10  ;;  %p329_p9 = scmp.lt.u32.totalorder %s325_s10, %s430_s1 }
  0x18   :  { %p331_p10 = pnand %p329_p9, %p326_p8 }
  0x1a   :  { %334 = shalt.err (!%p331_p10)
}
  0x1b   :  { %s335_s15 = scalar_lea.vmem %s389_s23, 1024  ;;  %p340_p12 = scmp.lt.s32.totalorder %s389_s23, %s389_s23 }
  0x1c   :  { %p336_p11 = scmp.ne.s32.totalorder %s389_s23, %s335_s15  ;;  %p341_p13 = scmp.lt.s32.totalorder %s335_s15, %s335_s15 }
  0x1e   :  { %p342_p0 = por %p341_p13, %p340_p12 }
  0x20   :  { %p343_p1 = pnand %p342_p0, %p336_p11 }
  0x22   :  { %346 = shalt.err (!%p343_p1)
}
  0x23   :  { %s353_s0 = smov 256   ;;  %s354_s16 = smov 16  }
  0x24   :  { %35 = dma.hbm_to_vmem [thread:$0]  %s430_s1, 1024, %s389_s23, [#allocation6], %s353_s0, %s353_s0, %s354_s16  }
  0x25   :  { %347 = dma.done.wait [#allocation4], 128  }
  0x26   :  { %348 = vsyncadd [#allocation4], 4294967168 }
  0x27   :  { %349 = dma.done.wait [#allocation6], 1024  }
  0x28   :  { %350 = vsyncadd [#allocation6], 4294966272  ;;  %v355_v1 = vmov 0   ;;  %v287_v2 = vld [vmem:[#allocation5 + $0x4] ss:$16 sps:$4 sm:$0xff]   ;;  %v49_v10 = vld [vmem:[#allocation3] sm:$0xff]  ;;  %v61_v12 = vlaneseq }
  0x29   :  { %157 = vmatprep.mubr.bf16.mxu0 %v355_v1  ;;  %198 = vmatprep.mubr.bf16.mxu1 %v355_v1  ;;  %v289_v3 = vld [vmem:[#allocation5 + $0xc] ss:$16 sps:$4 sm:$0xff]   ;;  %v291_v4 = vld [vmem:[#allocation5] ss:$16 sps:$4 sm:$0xff]   ;;  %v292_v5 = vld [vmem:[#allocation5 + $0x8] ss:$16 sps:$4 sm:$0xff]   ;;  %v50_v11 = vpack.c.bf16 %v49_v10, %v49_v10 }
  0x2a   :  { %125 = vmatprep.subr.bf16.mxu0 %v287_v2  ;;  %166 = vmatprep.subr.bf16.mxu1 %v289_v3  ;;  %v293_v6 = vld [vmem:[#allocation5 + $0x24] ss:$16 sps:$4 sm:$0xff]   ;;  %v295_v7 = vld [vmem:[#allocation5 + $0x2c] ss:$16 sps:$4 sm:$0xff]   ;;  %v297_v8 = vld [vmem:[#allocation5 + $0x20] ss:$16 sps:$4 sm:$0xff]  }
  0x2b   :  { %126 = vmatpush1.bf16.msra.mxu0 %v291_v4  ;;  %167 = vmatpush1.bf16.msra.mxu1 %v292_v5  ;;  %v298_v9 = vld [vmem:[#allocation5 + $0x28] ss:$16 sps:$4 sm:$0xff]   ;;  %vm121_vm0 = vcmask 261120   ;;  %v62_v13 = vshrl.u32 %v61_v12, 7  ;;  %v280_v55 = vld [vmem:[#allocation2] ss:$0 sm:$0xff] }
  0x2c   :  { %127 = vmatprep.subr.bf16.mxu0 %v293_v6  ;;  %168 = vmatprep.subr.bf16.mxu1 %v295_v7  ;;  %v59_v16 = vld [vmem:[%s431_s2] sm:$0xf]  ;;  %vm262_vm1 = vcmask 7168  }
  0x2d   :  { %v63_v14 = vsub.s32 0, %v62_v13  ;;  %v71_v15 = vsub.s32 2, %v62_v13  ;;  %v67_v17 = vsub.s32 1, %v62_v13  ;;  %v75_v18 = vsub.s32 3, %v62_v13  ;;  %v215_v24 = vld [vmem:[%s432_s3] sm:$0xf] }
  0x2f   :  { %128 = vmatpush1.bf16.msra.mxu0 %v297_v8  ;;  %169 = vmatpush1.bf16.msra.mxu1 %v298_v9  ;;  %v64_v19 = vrot.slane %v59_v16, %v63_v14  ;;  %v72_v20 = vrot.slane %v59_v16, %v71_v15  ;;  %v68_v21 = vrot.slane %v59_v16, %v67_v17 }
  0x30   :  { %v76_v22 = vrot.slane %v59_v16, %v75_v18  ;;  %v220_v35 = vrot.slane %v215_v24, %v63_v14  ;;  %v224_v40 = vrot.slane %v215_v24, %v67_v17  ;;  %v228_v45 = vrot.slane %v215_v24, %v71_v15 }
  0x31   :  { %v232_v49 = vrot.slane %v215_v24, %v75_v18 }
  0x32   :  { %278 = vmatmul.mubr.msk.bf16.vlgmr.msra.gmra.mrb[0].mxu0 %vm121_vm0, %v50_v11  ;;  %279 = vmatmul.mubr.msk.bf16.vlgmr.msra.gmra.mrb[0].mxu1 %vm121_vm0, %v50_v11 }
 0x105   :  { %v159_v23 = vpop.f32.mrb[0].mxu0  ;;  %v200_v25 = vpop.f32.mrb[0].mxu1 }
 0x106   :  { %v160_v26 = vadd.f32 %v159_v23, %v64_v19  ;;  %v201_v27 = vadd.f32 %v200_v25, %v72_v20  ;;  %v161_v28 = vpop.f32.mrb[1].mxu0  ;;  %v202_v29 = vpop.f32.mrb[1].mxu1 }
 0x107   :  { %v162_v30 = vadd.f32 %v161_v28, %v68_v21  ;;  %v203_v31 = vadd.f32 %v202_v29, %v76_v22  ;;  %v163_v32 = vpop.f32.mrb[2].mxu0  ;;  %v204_v33 = vpop.f32.mrb[2].mxu1 }
 0x108   :  { %v207_v34 = vmul.f32 0.01, %v160_v26  ;;  %v209_v36 = vmul.f32 0.01, %v201_v27  ;;  %v164_v37 = vpop.f32.mrb[3].mxu0  ;;  %v205_v38 = vpop.f32.mrb[3].mxu1 }
 0x109   :  { %v208_v39 = vmul.f32 0.01, %v162_v30  ;;  %v210_v41 = vmul.f32 0.01, %v203_v31 }
 0x10a   :  { %v211_v42 = vmax.f32 %v160_v26, %v207_v34  ;;  %v213_v43 = vmax.f32 %v201_v27, %v209_v36 }
 0x10b   :  { %v212_v44 = vmax.f32 %v162_v30, %v208_v39  ;;  %v214_v48 = vmax.f32 %v203_v31, %v210_v41 }
 0x10c   :  { %v237_v46 = vmul.f32 %v220_v35, %v211_v42  ;;  %v239_v50 = vmul.f32 %v228_v45, %v213_v43 }
 0x10d   :  { %v238_v47 = vmul.f32 %v224_v40, %v212_v44  ;;  %v240_v52 = vmul.f32 %v232_v49, %v214_v48 }
 0x10f   :  { %v241_v51 = vadd.f32 %v238_v47, %v237_v46 }
 0x111   :  { %v242_v53 = vadd.f32 %v241_v51, %v239_v50 }
 0x113   :  { %v243_v54 = vadd.f32 %v242_v53, %v240_v52 }
 0x115   :  { %244 = vadd.xlane.f32.xlu0 %v243_v54 }
 0x1a2   :  { %v245_v56 = vpop.xlane.xlu0 %244 }
 0x1a3   :  { %v253_v57 = vadd.f32 %v280_v55, %v245_v56 }
 0x1a5   :  { %v281_v58 = vclamps-f32 %v253_v57, 30.0 }
 0x1a7   :  { %v256_v59 = vsub.f32 0.0, %v281_v58 }
 0x1a9   :  { %v257_v60 = vmul.f32 1.442695, %v256_v59 }
 0x1ab   :  { %299 = vpow2.f32 %v257_v60 }
 0x1b5   :  { %v300_v61 = vpop.eup %299 }
 0x1b6   :  { %v259_v62 = vadd.f32 1.0, %v300_v61 }
 0x1b8   :  { %301 = vrcp.f32 %v259_v62 }
 0x1c2   :  { %v302_v63 = vpop.eup %301 }
 0x1c3   :  { %263 = vst.msk [vmem:[%s434_s5] sm:$0xff] %vm262_vm1, %v302_v63 }
 0x1c4   :  { %268 = vsyncpa [#allocation4], 1 }
 0x1c5   :  { %269 = vsyncpa [#allocation6], 1 }

</bundles_post_ra>
